<compile_context>
chip_gen: v6e
topology: v6e:2x2x1
jax: 0.10.0
libtpu: 0.0.40
codegen_flags: <defaults>
</compile_context>

<pallas_src>
from functools import partial

import jax
import jax.numpy as jnp
from jax.experimental import pallas as pl
from jax.experimental.pallas import tpu as pltpu

SLOPE = 0.01           # F.leaky_relu default negative_slope
BN_EPS = 1e-5          # nn.BatchNorm2d default eps

# bf16 matmul operands (MXU-native on v5e/v6e/v7x); accumulation and the
# BN / leaky-ReLU epilogues stay in f32.
MATMUL_DTYPE = jnp.bfloat16
ACT_DTYPE = jnp.bfloat16       # inter-kernel activation storage


# ----------------------------------------------------------------------------- VMEM budget / tiling
def _vmem_capacity_bytes():
    try:
        return int(getattr(pltpu.get_tpu_info(), "vmem_capacity_bytes", 64 << 20))
    except Exception:
        return 64 << 20


_VMEM_CAP = _vmem_capacity_bytes()
# Raise the scoped-VMEM limit above the 16/32 MiB defaults while staying under
# physical capacity (128 MiB v5e/v6e, 64 MiB per TensorCore on v7x).
_VMEM_LIMIT = int(min(max(_VMEM_CAP - (16 << 20), 32 << 20), 100 << 20))
# Budget for the double-buffered row-tiled operands of one kernel launch.
_TILE_VMEM_BUDGET = max(16 << 20, int(_VMEM_CAP * 0.5))
MAX_TILE_M = 2048      # lane-axis tile cap; the VMEM budget may lower it.


def _compiler_params():
    return pltpu.CompilerParams(dimension_semantics=("parallel",),
                                vmem_limit_bytes=_VMEM_LIMIT)


def _tile_m(M, bytes_per_col):
    """Pick a lane-axis (M = B*H*W) tile size.

    Tiles are multiples of 128 lanes (or the full M when M <= 128), sized so the
    double-buffered column-tiled operands stay inside the per-generation VMEM
    budget, and split into >= 2 tiles whenever possible so the 'parallel' grid
    axis shards across v7x's two TensorCores.  Never degrades below 128 lanes
    (fixes the old fallback that could produce 8-row tiles).
    """
    if M <= 128:
        return M, 1
    cap = min(MAX_TILE_M,
              max(128, (_TILE_VMEM_BUDGET // max(bytes_per_col, 1)) // 128 * 128))
    half = ((pl.cdiv(M, 2) + 127) // 128) * 128      # guarantee >= 2 tiles
    tile = min(cap, half)
    t = tile
    floor = max(128, tile // 2)
    while t >= floor:                                 # prefer an exact divisor
        if M % t == 0:
            return t, M // t
        t -= 128
    return tile, pl.cdiv(M, tile)                     # ragged last block (masked stores)


def _col_spec(rows, tile):
    """Block tiled along the lane (M) axis."""
    return pl.BlockSpec((rows, tile), lambda i: (0, i))


def _full_spec(rows, cols):
    """Grid-invariant operand (weights / packed BN vectors)."""
    # TODO(synk): mark these with pipeline_mode=pl.Buffered(1) (single buffer)
    # once confirmed supported, to reclaim VMEM on v7x's 64 MiB budget.
    return pl.BlockSpec((rows, cols), lambda i: (0, 0))


# ----------------------------------------------------------------------------- kernels (channels on sublanes, M on lanes)
def _mm_bn_act_kernel(w_ref, x_ref, v_ref, o_ref, *, act):
    """o = leaky?( (w @ x) * scale + bias ).  v = [scale | bias] packed (N, 2)."""
    y = jnp.dot(w_ref[...], x_ref[...], preferred_element_type=jnp.float32)
    v = v_ref[...]
    y = y * v[:, 0:1] + v[:, 1:2]
    if act:
        y = jnp.maximum(y, SLOPE * y)
    o_ref[...] = y.astype(o_ref.dtype)


def _resblock_tail_kernel(w_ref, x_ref, v_ref, r_ref, o_ref):
    """Fused ResidualBlock tail:
       leaky( bn( leaky( (w3 @ x)*s3 + b3 ) ) + shortcut ).
       v = [s3 | b3 | bn_s | bn_b] packed (N, 4)."""
    y = jnp.dot(w_ref[...], x_ref[...], preferred_element_type=jnp.float32)
    v = v_ref[...]
    y = y * v[:, 0:1] + v[:, 1:2]                  # conv3's BatchNorm
    y = jnp.maximum(y, SLOPE * y)                  # conv3's leaky-ReLU
    y = y * v[:, 2:3] + v[:, 3:4]                  # residual-block BatchNorm
    y = y + r_ref[...].astype(jnp.float32)         # shortcut add
    o_ref[...] = jnp.maximum(y, SLOPE * y).astype(o_ref.dtype)


def _stem_tail_kernel(wt1_ref, w0_ref, w1_ref, h_ref, x0_ref, v1_ref, vt_ref,
                      o_ref, bc_ref):
    """Fused trans_part1 + final `trans` (no concat, no out1 HBM round trip):
         t   = leaky( (w_tp1 @ h) * s1 + b1 )           -> before_concat output
         out = leaky( (w0 @ out0 + w1 @ t) * s + b )
    """
    t = jnp.dot(wt1_ref[...], h_ref[...], preferred_element_type=jnp.float32)
    v1 = v1_ref[...]
    t = t * v1[:, 0:1] + v1[:, 1:2]
    t = jnp.maximum(t, SLOPE * t)
    bc_ref[...] = t.astype(bc_ref.dtype)
    y = jnp.dot(w0_ref[...], x0_ref[...], preferred_element_type=jnp.float32)
    y = y + jnp.dot(w1_ref[...], t.astype(w1_ref.dtype),
                    preferred_element_type=jnp.float32)
    vt = vt_ref[...]
    y = y * vt[:, 0:1] + vt[:, 1:2]
    o_ref[...] = jnp.maximum(y, SLOPE * y).astype(o_ref.dtype)


# ----------------------------------------------------------------------------- fused matmul wrappers
def fused_conv_bn_act(w, x, vec, *, act=True, out_dtype=ACT_DTYPE):
    """1x1 conv (or block-diagonal grouped 3x3) + folded BN + optional leaky.
       w: (N, K) bf16, x: (K, M) channels-first, vec: (N, 2) f32."""
    N, K = w.shape
    M = x.shape[1]
    in_b = jnp.dtype(MATMUL_DTYPE).itemsize
    out_b = jnp.dtype(out_dtype).itemsize
    tile, ntiles = _tile_m(M, 2 * (K * in_b + N * out_b))
    return pl.pallas_call(
        partial(_mm_bn_act_kernel, act=act),
        out_shape=jax.ShapeDtypeStruct((N, M), out_dtype),
        grid_spec=pltpu.PrefetchScalarGridSpec(
            num_scalar_prefetch=0,
            grid=(ntiles,),
            in_specs=[_full_spec(N, K), _col_spec(K, tile), _full_spec(N, 2)],
            out_specs=_col_spec(N, tile)),
        compiler_params=_compiler_params(),
    )(w, x.astype(MATMUL_DTYPE), vec)


def fused_resblock_tail(w3, x, vec4, res):
    """conv3 matmul + BN3 + leaky + block BN + shortcut add + leaky, one kernel."""
    N, K = w3.shape
    M = x.shape[1]
    in_b = jnp.dtype(MATMUL_DTYPE).itemsize
    res_b = jnp.dtype(res.dtype).itemsize
    out_b = jnp.dtype(ACT_DTYPE).itemsize
    tile, ntiles = _tile_m(M, 2 * (K * in_b + N * res_b + N * out_b))
    return pl.pallas_call(
        _resblock_tail_kernel,
        out_shape=jax.ShapeDtypeStruct((N, M), ACT_DTYPE),
        grid_spec=pltpu.PrefetchScalarGridSpec(
            num_scalar_prefetch=0,
            grid=(ntiles,),
            in_specs=[_full_spec(N, K), _col_spec(K, tile), _full_spec(N, 4),
                      _col_spec(N, tile)],
            out_specs=_col_spec(N, tile)),
        compiler_params=_compiler_params(),
    )(w3, x.astype(MATMUL_DTYPE), vec4, res)


def fused_stem_tail(wt1, w0, w1, h, out0, v1, vt, out_dtype=jnp.float32):
    """trans_part1 conv + final dual-dot `trans` conv fused; two outputs."""
    hid, Kh = wt1.shape
    N = w0.shape[0]
    M = h.shape[1]
    in_b = jnp.dtype(MATMUL_DTYPE).itemsize
    out_b = jnp.dtype(out_dtype).itemsize
    tile, ntiles = _tile_m(M, 2 * (2 * Kh * in_b + (N + hid) * out_b))
    return pl.pallas_call(
        _stem_tail_kernel,
        out_shape=(jax.ShapeDtypeStruct((N, M), out_dtype),
                   jax.ShapeDtypeStruct((hid, M), out_dtype)),
        grid_spec=pltpu.PrefetchScalarGridSpec(
            num_scalar_prefetch=0,
            grid=(ntiles,),
            in_specs=[_full_spec(hid, Kh), _full_spec(N, hid), _full_spec(N, hid),
                      _col_spec(Kh, tile), _col_spec(hid, tile),
                      _full_spec(hid, 2), _full_spec(N, 2)],
            out_specs=(_col_spec(N, tile), _col_spec(hid, tile))),
        compiler_params=_compiler_params(),
    )(wt1, w0, w1, h.astype(MATMUL_DTYPE), out0.astype(MATMUL_DTYPE), v1, vt)


# ----------------------------------------------------------------------------- glue (channels-first spatial ops)
def im2col_3x3(x, stride):
    """x: (C, B, H, W) -> patches (9*C, B*Ho*Wo), tap-major K axis (matches the
    pre-built block-diagonal grouped weight)."""
    C, B, H, W = x.shape
    Ho = (H + 2 - 3) // stride + 1
    Wo = (W + 2 - 3) // stride + 1
    xp = jnp.pad(x, ((0, 0), (0, 0), (1, 1), (1, 1)))
    taps = []
    for ky in range(3):
        for kx in range(3):
            taps.append(xp[:, :, ky: ky + stride * (Ho - 1) + 1: stride,
                               kx: kx + stride * (Wo - 1) + 1: stride])
    p = jnp.stack(taps, axis=0)                       # (9, C, B, Ho, Wo)
    # TODO(synk): replace this XLA-side im2col (9x HBM read expansion) with an
    # in-kernel halo-tiled 9-tap accumulation grid.
    return p.reshape(9 * C, B * Ho * Wo), Ho, Wo


def avgpool2d(x, s):
    """x: (C, B, H, W); s x s average pool (mean accumulated in f32)."""
    C, B, H, W = x.shape
    y = x.astype(jnp.float32).reshape(C, B, H // s, s, W // s, s).mean(axis=(3, 5))
    return y.astype(x.dtype)


# ----------------------------------------------------------------------------- parameters (deterministic synthetic init, all prep hoisted here)
def fold_bn(gamma, beta, mean, var, eps=BN_EPS):
    scale = gamma / jnp.sqrt(var + eps)
    bias = beta - mean * scale
    return scale, bias


def _init_bn(key, c):
    k = jax.random.split(key, 4)
    gamma = jax.random.uniform(k[0], (c,), jnp.float32, 0.5, 1.5)
    beta = jax.random.normal(k[1], (c,), jnp.float32) * 0.1
    mean = jax.random.normal(k[2], (c,), jnp.float32) * 0.1
    var = jax.random.uniform(k[3], (c,), jnp.float32, 0.5, 1.5)
    return fold_bn(gamma, beta, mean, var)


def _pack(*vecs):
    return jnp.stack(vecs, axis=1).astype(jnp.float32)      # (N, len(vecs))


def init_conv1x1(key, cin, cout):
    kw, kb = jax.random.split(key)
    w = jax.random.normal(kw, (cout, cin, 1, 1), jnp.float32) * 0.1
    scale, bias = _init_bn(kb, cout)
    return dict(w=w.reshape(cout, cin).astype(MATMUL_DTYPE),      # (N, K)
                v=_pack(scale, bias))


def init_grouped_conv3x3(key, cin, cout, groups):
    kw, kb = jax.random.split(key)
    gin, gout = cin // groups, cout // groups
    w = jax.random.normal(kw, (cout, gin, 3, 3), jnp.float32) * 0.1
    scale, bias = _init_bn(kb, cout)
    # Pre-built block-diagonal (Cout, 9*Cin) weight -> one lane-dense matmul.
    # TODO(synk): for large cardinality (e.g. 32) switch to a per-group grid /
    # batched einsum so the MXU only performs the non-zero FLOPs.
    wf = jnp.zeros((9, cin, cout), jnp.float32)
    for g in range(groups):
        wg = w[g * gout:(g + 1) * gout]                       # (gout, gin, 3, 3)
        wg = jnp.transpose(wg, (2, 3, 1, 0)).reshape(9, gin, gout)
        wf = wf.at[:, g * gin:(g + 1) * gin, g * gout:(g + 1) * gout].set(wg)
    wT = wf.reshape(9 * cin, cout).T                          # (Cout, 9*Cin)
    return dict(w=wT.astype(MATMUL_DTYPE), v=_pack(scale, bias))


def init_residual_block(key, cin, cardinality, group_width, stride):
    hidden = cardinality * group_width
    k1, k2, k3, k4, k5 = jax.random.split(key, 5)
    p = dict(stride=stride, has_sc_conv=(cin != hidden))
    p['conv1'] = init_conv1x1(k1, cin, hidden)
    p['conv2'] = init_grouped_conv3x3(k2, hidden, hidden, cardinality)
    kw3, kb3 = jax.random.split(k3)
    w3 = jax.random.normal(kw3, (hidden, hidden, 1, 1), jnp.float32) * 0.1
    s3, b3 = _init_bn(kb3, hidden)
    bn_s, bn_b = _init_bn(k4, hidden)
    p['w3'] = w3.reshape(hidden, hidden).astype(MATMUL_DTYPE)
    p['v3'] = _pack(s3, b3, bn_s, bn_b)                       # packed (hidden, 4)
    if p['has_sc_conv']:
        ksw, ksb, kbn = jax.random.split(k5, 3)
        w = jax.random.normal(ksw, (hidden, cin, 1, 1), jnp.float32) * 0.1
        cb = jax.random.normal(ksb, (hidden,), jnp.float32) * 0.1   # conv bias (bias=True)
        s0, b0 = _init_bn(kbn, hidden)
        p['sc'] = dict(w=w.reshape(hidden, cin).astype(MATMUL_DTYPE),
                       v=_pack(s0, b0 + s0 * cb))             # fold conv bias into BN bias
    return p


def init_stem_params(key, in_channels, num_blocks, cardinality, group_width, stride):
    c0 = in_channels // 2
    c1 = in_channels - c0
    hidden = cardinality * group_width
    out_c = hidden * 2
    keys = jax.random.split(key, 3 + num_blocks)
    params = dict(c0=c0, hidden=hidden, stride=stride)
    params['trans_part0'] = init_conv1x1(keys[0], c0, hidden)
    params['trans_part1'] = init_conv1x1(keys[1], hidden, hidden)
    # final `trans` conv on cat([out0, out1]): pre-split its (out_c, 2*hidden)
    # weight so the concat never has to be materialized.
    kt = init_conv1x1(keys[2], out_c, out_c)
    params['trans_w0'] = kt['w'][:, :hidden]
    params['trans_w1'] = kt['w'][:, hidden:]
    params['trans_v'] = kt['v']
    strides = [stride] + [1] * (num_blocks - 1)
    chans = [c1] + [hidden] * (num_blocks - 1)
    params['blocks'] = [init_residual_block(keys[3 + i], c, cardinality, group_width, s)
                        for i, (c, s) in enumerate(zip(chans, strides))]
    return params


# ----------------------------------------------------------------------------- forward
def residual_block_forward(x, p):
    """x: (Cin, B, H, W) channels-first; returns (hidden, B, Ho, Wo)."""
    Cin, B, H, W = x.shape
    hidden = p['w3'].shape[0]
    h = fused_conv_bn_act(p['conv1']['w'], x.reshape(Cin, B * H * W),
                          p['conv1']['v'], act=True)
    h = h.reshape(hidden, B, H, W)

    xm, Ho, Wo = im2col_3x3(h, p['stride'])
    g = fused_conv_bn_act(p['conv2']['w'], xm, p['conv2']['v'], act=True)

    sc = x
    if p['has_sc_conv']:
        sc = fused_conv_bn_act(p['sc']['w'], sc.reshape(Cin, B * H * W),
                               p['sc']['v'], act=False).reshape(hidden, B, H, W)
    if p['stride'] != 1:
        sc = avgpool2d(sc, p['stride'])
    sc = sc.reshape(hidden, B * Ho * Wo)

    out = fused_resblock_tail(p['w3'], g, p['v3'], sc)
    return out.reshape(hidden, B, Ho, Wo)


def stem_forward(x_nchw, params):
    B, C, H, W = x_nchw.shape
    x = jnp.transpose(x_nchw, (1, 0, 2, 3))          # channels-first (C, B, H, W)
    c0 = params['c0']
    hidden = params['hidden']
    s = params['stride']
    x0, x1 = x[:c0], x[c0:]

    # trans_part0: 1x1 conv + BN + leaky, then avgpool(stride)
    tp0 = params['trans_part0']
    out0 = fused_conv_bn_act(tp0['w'], x0.reshape(c0, B * H * W), tp0['v'], act=True)
    out0 = avgpool2d(out0.reshape(hidden, B, H, W), s)
    # TODO(synk): fuse the avgpool into the trans_part0 kernel epilogue to avoid
    # the full-resolution HBM round trip (biggest relative cost on v5e).

    h = x1
    for blk in params['blocks']:
        h = residual_block_forward(h, blk)

    Hs, Ws = h.shape[2], h.shape[3]
    M = B * Hs * Ws
    tp1 = params['trans_part1']
    out, before_concat = fused_stem_tail(
        tp1['w'], params['trans_w0'], params['trans_w1'],
        h.reshape(hidden, M), out0.reshape(hidden, M),
        tp1['v'], params['trans_v'])

    out_c = params['trans_w0'].shape[0]
    out = jnp.transpose(out.reshape(out_c, B, Hs, Ws), (1, 0, 2, 3))
    before_concat = jnp.transpose(before_concat.reshape(hidden, B, Hs, Ws),
                                  (1, 0, 2, 3))
    return out, before_concat                         # NCHW, like the reference


# ----------------------------------------------------------------------------- main
if __name__ == "__main__":
    key = jax.random.PRNGKey(0)
    in_channels, num_blocks, cardinality, group_width, stride = 4, 2, 2, 4, 2
    hidden = cardinality * group_width

    kp, kx = jax.random.split(key)
    params = init_stem_params(kp, in_channels, num_blocks, cardinality,
                              group_width, stride)
    x = jax.random.normal(kx, (2, in_channels, 16, 16), jnp.float32)

    forward = jax.jit(lambda inp: stem_forward(inp, params))
    out, before_concat = forward(x)
    jax.block_until_ready((out, before_concat))

    assert out.shape == (2, 2 * hidden, 16 // stride, 16 // stride), out.shape
    assert before_concat.shape == (2, hidden, 16 // stride, 16 // stride), before_concat.shape
    assert bool(jnp.isfinite(out).all()) and bool(jnp.isfinite(before_concat).all())
    print("KERNEL_OK")
</pallas_src>

<mosaic_0001>
module attributes {stable_mosaic.version = 11 : i64} {
  func.func @_mm_bn_act_kernel(%arg0: i32, %arg1: memref<8x2xbf16, #tpu.memory_space<vmem>>, %arg2: memref<2x256xbf16, #tpu.memory_space<vmem>>, %arg3: memref<8x2xf32, #tpu.memory_space<vmem>>, %arg4: memref<8x256xbf16, #tpu.memory_space<vmem>>) attributes {dimension_semantics = [#tpu.dimension_semantics<parallel>], iteration_bounds = array<i64: 2>, scalar_prefetch = 0 : i64, scratch_operands = 0 : i64, tpu.core_type = #tpu.core_type<tc>, window_params = [{pipeline_mode = #tpu.pipeline_mode<synchronous>, transform_indices = @transform_0, window_bounds = array<i64: 8, 2>}, {transform_indices = @transform_1, window_bounds = array<i64: 2, 256>}, {pipeline_mode = #tpu.pipeline_mode<synchronous>, transform_indices = @transform_2, window_bounds = array<i64: 8, 2>}, {transform_indices = @transform_3, window_bounds = array<i64: 8, 256>}]} {
    %c0 = arith.constant 0 : index
    %c0_0 = arith.constant 0 : index
    %0 = vector.load %arg1[%c0, %c0_0] : memref<8x2xbf16, #tpu.memory_space<vmem>>, vector<8x2xbf16>
    %c0_1 = arith.constant 0 : index
    %c0_2 = arith.constant 0 : index
    %1 = vector.load %arg2[%c0_1, %c0_2] : memref<2x256xbf16, #tpu.memory_space<vmem>>, vector<2x256xbf16>
    %cst = arith.constant dense<0.000000e+00> : vector<8x256xf32>
    %2 = tpu.matmul %0, %1, %cst {dimension_numbers = #tpu.dot_dimension_numbers<[1], [0], [0], [1], [0, 0, 1, 1], [], []>} : vector<8x2xbf16>, vector<2x256xbf16>, vector<8x256xf32> -> vector<8x256xf32>
    %c0_3 = arith.constant 0 : index
    %c0_4 = arith.constant 0 : index
    %3 = vector.load %arg3[%c0_3, %c0_4] : memref<8x2xf32, #tpu.memory_space<vmem>>, vector<8x2xf32>
    %4 = vector.extract_strided_slice %3 {offsets = [0, 0], sizes = [8, 1], strides = [1, 1]} : vector<8x2xf32> to vector<8x1xf32>
    %5 = vector.broadcast %4 : vector<8x1xf32> to vector<8x256xf32>
    %6 = arith.mulf %2, %5 : vector<8x256xf32>
    %7 = vector.extract_strided_slice %3 {offsets = [0, 1], sizes = [8, 1], strides = [1, 1]} : vector<8x2xf32> to vector<8x1xf32>
    %8 = vector.broadcast %7 : vector<8x1xf32> to vector<8x256xf32>
    %9 = arith.addf %6, %8 : vector<8x256xf32>
    %cst_5 = arith.constant 0.00999999977 : f32
    %10 = vector.broadcast %cst_5 : f32 to vector<8x256xf32>
    %11 = arith.mulf %10, %9 : vector<8x256xf32>
    %12 = arith.maximumf %9, %11 : vector<8x256xf32>
    %13 = arith.truncf %12 : vector<8x256xf32> to vector<8x256xbf16>
    %c0_6 = arith.constant 0 : index
    %c0_7 = arith.constant 0 : index
    %14 = vector.load %arg4[%c0_6, %c0_7] : memref<8x256xbf16, #tpu.memory_space<vmem>>, vector<8x256xbf16>
    tpu.vector_store %arg4[%c0_6, %c0_7], %13 {strides = array<i32>} : memref<8x256xbf16, #tpu.memory_space<vmem>>, vector<8x256xbf16>,
    return
  }
  func.func @transform_0(%arg0: i32) -> (i32, i32) {
    %c0_i32 = arith.constant 0 : i32
    %c0_i32_0 = arith.constant 0 : i32
    %c0_i32_1 = arith.constant 0 : i32
    return %c0_i32, %c0_i32_0 : i32, i32
  }
  func.func @transform_1(%arg0: i32) -> (i32, i32) {
    %c0_i32 = arith.constant 0 : i32
    %c0_i32_0 = arith.constant 0 : i32
    return %c0_i32, %arg0 : i32, i32
  }
  func.func @transform_2(%arg0: i32) -> (i32, i32) {
    %c0_i32 = arith.constant 0 : i32
    %c0_i32_0 = arith.constant 0 : i32
    %c0_i32_1 = arith.constant 0 : i32
    return %c0_i32, %c0_i32_0 : i32, i32
  }
  func.func @transform_3(%arg0: i32) -> (i32, i32) {
    %c0_i32 = arith.constant 0 : i32
    %c0_i32_0 = arith.constant 0 : i32
    return %c0_i32, %arg0 : i32, i32
  }
}

module attributes {stable_mosaic.version = 11 : i64} {
  func.func @_mm_bn_act_kernel(%arg0: i32, %arg1: memref<8x72xbf16, #tpu.memory_space<vmem>>, %arg2: memref<72x128xbf16, #tpu.memory_space<vmem>>, %arg3: memref<8x2xf32, #tpu.memory_space<vmem>>, %arg4: memref<8x128xbf16, #tpu.memory_space<vmem>>) attributes {dimension_semantics = [#tpu.dimension_semantics<parallel>], iteration_bounds = array<i64: 1>, scalar_prefetch = 0 : i64, scratch_operands = 0 : i64, tpu.core_type = #tpu.core_type<tc>, window_params = [{pipeline_mode = #tpu.pipeline_mode<synchronous>, transform_indices = @transform_0, window_bounds = array<i64: 8, 72>}, {transform_indices = @transform_1, window_bounds = array<i64: 72, 128>}, {pipeline_mode = #tpu.pipeline_mode<synchronous>, transform_indices = @transform_2, window_bounds = array<i64: 8, 2>}, {transform_indices = @transform_3, window_bounds = array<i64: 8, 128>}]} {
    %c0 = arith.constant 0 : index
    %c0_0 = arith.constant 0 : index
    %0 = vector.load %arg1[%c0, %c0_0] : memref<8x72xbf16, #tpu.memory_space<vmem>>, vector<8x72xbf16>
    %c0_1 = arith.constant 0 : index
    %c0_2 = arith.constant 0 : index
    %1 = vector.load %arg2[%c0_1, %c0_2] : memref<72x128xbf16, #tpu.memory_space<vmem>>, vector<72x128xbf16>
    %cst = arith.constant dense<0.000000e+00> : vector<8x128xf32>
    %2 = tpu.matmul %0, %1, %cst {dimension_numbers = #tpu.dot_dimension_numbers<[1], [0], [0], [1], [0, 0, 1, 1], [], []>} : vector<8x72xbf16>, vector<72x128xbf16>, vector<8x128xf32> -> vector<8x128xf32>
    %c0_3 = arith.constant 0 : index
    %c0_4 = arith.constant 0 : index
    %3 = vector.load %arg3[%c0_3, %c0_4] : memref<8x2xf32, #tpu.memory_space<vmem>>, vector<8x2xf32>
    %4 = vector.extract_strided_slice %3 {offsets = [0, 0], sizes = [8, 1], strides = [1, 1]} : vector<8x2xf32> to vector<8x1xf32>
    %5 = vector.broadcast %4 : vector<8x1xf32> to vector<8x128xf32>
    %6 = arith.mulf %2, %5 : vector<8x128xf32>
    %7 = vector.extract_strided_slice %3 {offsets = [0, 1], sizes = [8, 1], strides = [1, 1]} : vector<8x2xf32> to vector<8x1xf32>
    %8 = vector.broadcast %7 : vector<8x1xf32> to vector<8x128xf32>
    %9 = arith.addf %6, %8 : vector<8x128xf32>
    %cst_5 = arith.constant 0.00999999977 : f32
    %10 = vector.broadcast %cst_5 : f32 to vector<8x128xf32>
    %11 = arith.mulf %10, %9 : vector<8x128xf32>
    %12 = arith.maximumf %9, %11 : vector<8x128xf32>
    %13 = arith.truncf %12 : vector<8x128xf32> to vector<8x128xbf16>
    %c0_6 = arith.constant 0 : index
    %c0_7 = arith.constant 0 : index
    %14 = vector.load %arg4[%c0_6, %c0_7] : memref<8x128xbf16, #tpu.memory_space<vmem>>, vector<8x128xbf16>
    tpu.vector_store %arg4[%c0_6, %c0_7], %13 {strides = array<i32>} : memref<8x128xbf16, #tpu.memory_space<vmem>>, vector<8x128xbf16>,
    return
  }
  func.func @transform_0(%arg0: i32) -> (i32, i32) {
    %c0_i32 = arith.constant 0 : i32
    %c0_i32_0 = arith.constant 0 : i32
    %c0_i32_1 = arith.constant 0 : i32
    return %c0_i32, %c0_i32_0 : i32, i32
  }
  func.func @transform_1(%arg0: i32) -> (i32, i32) {
    %c0_i32 = arith.constant 0 : i32
    %c0_i32_0 = arith.constant 0 : i32
    return %c0_i32, %arg0 : i32, i32
  }
  func.func @transform_2(%arg0: i32) -> (i32, i32) {
    %c0_i32 = arith.constant 0 : i32
    %c0_i32_0 = arith.constant 0 : i32
    %c0_i32_1 = arith.constant 0 : i32
    return %c0_i32, %c0_i32_0 : i32, i32
  }
  func.func @transform_3(%arg0: i32) -> (i32, i32) {
    %c0_i32 = arith.constant 0 : i32
    %c0_i32_0 = arith.constant 0 : i32
    return %c0_i32, %arg0 : i32, i32
  }
}

module attributes {stable_mosaic.version = 11 : i64} {
  func.func @_mm_bn_act_kernel(%arg0: i32, %arg1: memref<8x2xbf16, #tpu.memory_space<vmem>>, %arg2: memref<2x256xbf16, #tpu.memory_space<vmem>>, %arg3: memref<8x2xf32, #tpu.memory_space<vmem>>, %arg4: memref<8x256xbf16, #tpu.memory_space<vmem>>) attributes {dimension_semantics = [#tpu.dimension_semantics<parallel>], iteration_bounds = array<i64: 2>, scalar_prefetch = 0 : i64, scratch_operands = 0 : i64, tpu.core_type = #tpu.core_type<tc>, window_params = [{pipeline_mode = #tpu.pipeline_mode<synchronous>, transform_indices = @transform_0, window_bounds = array<i64: 8, 2>}, {transform_indices = @transform_1, window_bounds = array<i64: 2, 256>}, {pipeline_mode = #tpu.pipeline_mode<synchronous>, transform_indices = @transform_2, window_bounds = array<i64: 8, 2>}, {transform_indices = @transform_3, window_bounds = array<i64: 8, 256>}]} {
    %c0 = arith.constant 0 : index
    %c0_0 = arith.constant 0 : index
    %0 = vector.load %arg1[%c0, %c0_0] : memref<8x2xbf16, #tpu.memory_space<vmem>>, vector<8x2xbf16>
    %c0_1 = arith.constant 0 : index
    %c0_2 = arith.constant 0 : index
    %1 = vector.load %arg2[%c0_1, %c0_2] : memref<2x256xbf16, #tpu.memory_space<vmem>>, vector<2x256xbf16>
    %cst = arith.constant dense<0.000000e+00> : vector<8x256xf32>
    %2 = tpu.matmul %0, %1, %cst {dimension_numbers = #tpu.dot_dimension_numbers<[1], [0], [0], [1], [0, 0, 1, 1], [], []>} : vector<8x2xbf16>, vector<2x256xbf16>, vector<8x256xf32> -> vector<8x256xf32>
    %c0_3 = arith.constant 0 : index
    %c0_4 = arith.constant 0 : index
    %3 = vector.load %arg3[%c0_3, %c0_4] : memref<8x2xf32, #tpu.memory_space<vmem>>, vector<8x2xf32>
    %4 = vector.extract_strided_slice %3 {offsets = [0, 0], sizes = [8, 1], strides = [1, 1]} : vector<8x2xf32> to vector<8x1xf32>
    %5 = vector.broadcast %4 : vector<8x1xf32> to vector<8x256xf32>
    %6 = arith.mulf %2, %5 : vector<8x256xf32>
    %7 = vector.extract_strided_slice %3 {offsets = [0, 1], sizes = [8, 1], strides = [1, 1]} : vector<8x2xf32> to vector<8x1xf32>
    %8 = vector.broadcast %7 : vector<8x1xf32> to vector<8x256xf32>
    %9 = arith.addf %6, %8 : vector<8x256xf32>
    %10 = arith.truncf %9 : vector<8x256xf32> to vector<8x256xbf16>
    %c0_5 = arith.constant 0 : index
    %c0_6 = arith.constant 0 : index
    %11 = vector.load %arg4[%c0_5, %c0_6] : memref<8x256xbf16, #tpu.memory_space<vmem>>, vector<8x256xbf16>
    tpu.vector_store %arg4[%c0_5, %c0_6], %10 {strides = array<i32>} : memref<8x256xbf16, #tpu.memory_space<vmem>>, vector<8x256xbf16>,
    return
  }
  func.func @transform_0(%arg0: i32) -> (i32, i32) {
    %c0_i32 = arith.constant 0 : i32
    %c0_i32_0 = arith.constant 0 : i32
    %c0_i32_1 = arith.constant 0 : i32
    return %c0_i32, %c0_i32_0 : i32, i32
  }
  func.func @transform_1(%arg0: i32) -> (i32, i32) {
    %c0_i32 = arith.constant 0 : i32
    %c0_i32_0 = arith.constant 0 : i32
    return %c0_i32, %arg0 : i32, i32
  }
  func.func @transform_2(%arg0: i32) -> (i32, i32) {
    %c0_i32 = arith.constant 0 : i32
    %c0_i32_0 = arith.constant 0 : i32
    %c0_i32_1 = arith.constant 0 : i32
    return %c0_i32, %c0_i32_0 : i32, i32
  }
  func.func @transform_3(%arg0: i32) -> (i32, i32) {
    %c0_i32 = arith.constant 0 : i32
    %c0_i32_0 = arith.constant 0 : i32
    return %c0_i32, %arg0 : i32, i32
  }
}

module attributes {stable_mosaic.version = 11 : i64} {
  func.func @_resblock_tail_kernel(%arg0: i32, %arg1: memref<8x8xbf16, #tpu.memory_space<vmem>>, %arg2: memref<8x128xbf16, #tpu.memory_space<vmem>>, %arg3: memref<8x4xf32, #tpu.memory_space<vmem>>, %arg4: memref<8x128xbf16, #tpu.memory_space<vmem>>, %arg5: memref<8x128xbf16, #tpu.memory_space<vmem>>) attributes {dimension_semantics = [#tpu.dimension_semantics<parallel>], iteration_bounds = array<i64: 1>, scalar_prefetch = 0 : i64, scratch_operands = 0 : i64, tpu.core_type = #tpu.core_type<tc>, window_params = [{pipeline_mode = #tpu.pipeline_mode<synchronous>, transform_indices = @transform_0, window_bounds = array<i64: 8, 8>}, {transform_indices = @transform_1, window_bounds = array<i64: 8, 128>}, {pipeline_mode = #tpu.pipeline_mode<synchronous>, transform_indices = @transform_2, window_bounds = array<i64: 8, 4>}, {transform_indices = @transform_3, window_bounds = array<i64: 8, 128>}, {transform_indices = @transform_4, window_bounds = array<i64: 8, 128>}]} {
    %c0 = arith.constant 0 : index
    %c0_0 = arith.constant 0 : index
    %0 = vector.load %arg1[%c0, %c0_0] : memref<8x8xbf16, #tpu.memory_space<vmem>>, vector<8x8xbf16>
    %c0_1 = arith.constant 0 : index
    %c0_2 = arith.constant 0 : index
    %1 = vector.load %arg2[%c0_1, %c0_2] : memref<8x128xbf16, #tpu.memory_space<vmem>>, vector<8x128xbf16>
    %cst = arith.constant dense<0.000000e+00> : vector<8x128xf32>
    %2 = tpu.matmul %0, %1, %cst {dimension_numbers = #tpu.dot_dimension_numbers<[1], [0], [0], [1], [0, 0, 1, 1], [], []>} : vector<8x8xbf16>, vector<8x128xbf16>, vector<8x128xf32> -> vector<8x128xf32>
    %c0_3 = arith.constant 0 : index
    %c0_4 = arith.constant 0 : index
    %3 = vector.load %arg3[%c0_3, %c0_4] : memref<8x4xf32, #tpu.memory_space<vmem>>, vector<8x4xf32>
    %4 = vector.extract_strided_slice %3 {offsets = [0, 0], sizes = [8, 1], strides = [1, 1]} : vector<8x4xf32> to vector<8x1xf32>
    %5 = vector.broadcast %4 : vector<8x1xf32> to vector<8x128xf32>
    %6 = arith.mulf %2, %5 : vector<8x128xf32>
    %7 = vector.extract_strided_slice %3 {offsets = [0, 1], sizes = [8, 1], strides = [1, 1]} : vector<8x4xf32> to vector<8x1xf32>
    %8 = vector.broadcast %7 : vector<8x1xf32> to vector<8x128xf32>
    %9 = arith.addf %6, %8 : vector<8x128xf32>
    %cst_5 = arith.constant 0.00999999977 : f32
    %10 = vector.broadcast %cst_5 : f32 to vector<8x128xf32>
    %11 = arith.mulf %10, %9 : vector<8x128xf32>
    %12 = arith.maximumf %9, %11 : vector<8x128xf32>
    %13 = vector.extract_strided_slice %3 {offsets = [0, 2], sizes = [8, 1], strides = [1, 1]} : vector<8x4xf32> to vector<8x1xf32>
    %14 = vector.broadcast %13 : vector<8x1xf32> to vector<8x128xf32>
    %15 = arith.mulf %12, %14 : vector<8x128xf32>
    %16 = vector.extract_strided_slice %3 {offsets = [0, 3], sizes = [8, 1], strides = [1, 1]} : vector<8x4xf32> to vector<8x1xf32>
    %17 = vector.broadcast %16 : vector<8x1xf32> to vector<8x128xf32>
    %18 = arith.addf %15, %17 : vector<8x128xf32>
    %c0_6 = arith.constant 0 : index
    %c0_7 = arith.constant 0 : index
    %19 = vector.load %arg4[%c0_6, %c0_7] : memref<8x128xbf16, #tpu.memory_space<vmem>>, vector<8x128xbf16>
    %20 = arith.extf %19 : vector<8x128xbf16> to vector<8x128xf32>
    %21 = arith.addf %18, %20 : vector<8x128xf32>
    %cst_8 = arith.constant 0.00999999977 : f32
    %22 = vector.broadcast %cst_8 : f32 to vector<8x128xf32>
    %23 = arith.mulf %22, %21 : vector<8x128xf32>
    %24 = arith.maximumf %21, %23 : vector<8x128xf32>
    %25 = arith.truncf %24 : vector<8x128xf32> to vector<8x128xbf16>
    %c0_9 = arith.constant 0 : index
    %c0_10 = arith.constant 0 : index
    %26 = vector.load %arg5[%c0_9, %c0_10] : memref<8x128xbf16, #tpu.memory_space<vmem>>, vector<8x128xbf16>
    tpu.vector_store %arg5[%c0_9, %c0_10], %25 {strides = array<i32>} : memref<8x128xbf16, #tpu.memory_space<vmem>>, vector<8x128xbf16>,
    return
  }
  func.func @transform_0(%arg0: i32) -> (i32, i32) {
    %c0_i32 = arith.constant 0 : i32
    %c0_i32_0 = arith.constant 0 : i32
    %c0_i32_1 = arith.constant 0 : i32
    return %c0_i32, %c0_i32_0 : i32, i32
  }
  func.func @transform_1(%arg0: i32) -> (i32, i32) {
    %c0_i32 = arith.constant 0 : i32
    %c0_i32_0 = arith.constant 0 : i32
    return %c0_i32, %arg0 : i32, i32
  }
  func.func @transform_2(%arg0: i32) -> (i32, i32) {
    %c0_i32 = arith.constant 0 : i32
    %c0_i32_0 = arith.constant 0 : i32
    %c0_i32_1 = arith.constant 0 : i32
    return %c0_i32, %c0_i32_0 : i32, i32
  }
  func.func @transform_3(%arg0: i32) -> (i32, i32) {
    %c0_i32 = arith.constant 0 : i32
    %c0_i32_0 = arith.constant 0 : i32
    return %c0_i32, %arg0 : i32, i32
  }
  func.func @transform_4(%arg0: i32) -> (i32, i32) {
    %c0_i32 = arith.constant 0 : i32
    %c0_i32_0 = arith.constant 0 : i32
    return %c0_i32, %arg0 : i32, i32
  }
}

module attributes {stable_mosaic.version = 11 : i64} {
  func.func @_mm_bn_act_kernel(%arg0: i32, %arg1: memref<8x8xbf16, #tpu.memory_space<vmem>>, %arg2: memref<8x128xbf16, #tpu.memory_space<vmem>>, %arg3: memref<8x2xf32, #tpu.memory_space<vmem>>, %arg4: memref<8x128xbf16, #tpu.memory_space<vmem>>) attributes {dimension_semantics = [#tpu.dimension_semantics<parallel>], iteration_bounds = array<i64: 1>, scalar_prefetch = 0 : i64, scratch_operands = 0 : i64, tpu.core_type = #tpu.core_type<tc>, window_params = [{pipeline_mode = #tpu.pipeline_mode<synchronous>, transform_indices = @transform_0, window_bounds = array<i64: 8, 8>}, {transform_indices = @transform_1, window_bounds = array<i64: 8, 128>}, {pipeline_mode = #tpu.pipeline_mode<synchronous>, transform_indices = @transform_2, window_bounds = array<i64: 8, 2>}, {transform_indices = @transform_3, window_bounds = array<i64: 8, 128>}]} {
    %c0 = arith.constant 0 : index
    %c0_0 = arith.constant 0 : index
    %0 = vector.load %arg1[%c0, %c0_0] : memref<8x8xbf16, #tpu.memory_space<vmem>>, vector<8x8xbf16>
    %c0_1 = arith.constant 0 : index
    %c0_2 = arith.constant 0 : index
    %1 = vector.load %arg2[%c0_1, %c0_2] : memref<8x128xbf16, #tpu.memory_space<vmem>>, vector<8x128xbf16>
    %cst = arith.constant dense<0.000000e+00> : vector<8x128xf32>
    %2 = tpu.matmul %0, %1, %cst {dimension_numbers = #tpu.dot_dimension_numbers<[1], [0], [0], [1], [0, 0, 1, 1], [], []>} : vector<8x8xbf16>, vector<8x128xbf16>, vector<8x128xf32> -> vector<8x128xf32>
    %c0_3 = arith.constant 0 : index
    %c0_4 = arith.constant 0 : index
    %3 = vector.load %arg3[%c0_3, %c0_4] : memref<8x2xf32, #tpu.memory_space<vmem>>, vector<8x2xf32>
    %4 = vector.extract_strided_slice %3 {offsets = [0, 0], sizes = [8, 1], strides = [1, 1]} : vector<8x2xf32> to vector<8x1xf32>
    %5 = vector.broadcast %4 : vector<8x1xf32> to vector<8x128xf32>
    %6 = arith.mulf %2, %5 : vector<8x128xf32>
    %7 = vector.extract_strided_slice %3 {offsets = [0, 1], sizes = [8, 1], strides = [1, 1]} : vector<8x2xf32> to vector<8x1xf32>
    %8 = vector.broadcast %7 : vector<8x1xf32> to vector<8x128xf32>
    %9 = arith.addf %6, %8 : vector<8x128xf32>
    %cst_5 = arith.constant 0.00999999977 : f32
    %10 = vector.broadcast %cst_5 : f32 to vector<8x128xf32>
    %11 = arith.mulf %10, %9 : vector<8x128xf32>
    %12 = arith.maximumf %9, %11 : vector<8x128xf32>
    %13 = arith.truncf %12 : vector<8x128xf32> to vector<8x128xbf16>
    %c0_6 = arith.constant 0 : index
    %c0_7 = arith.constant 0 : index
    %14 = vector.load %arg4[%c0_6, %c0_7] : memref<8x128xbf16, #tpu.memory_space<vmem>>, vector<8x128xbf16>
    tpu.vector_store %arg4[%c0_6, %c0_7], %13 {strides = array<i32>} : memref<8x128xbf16, #tpu.memory_space<vmem>>, vector<8x128xbf16>,
    return
  }
  func.func @transform_0(%arg0: i32) -> (i32, i32) {
    %c0_i32 = arith.constant 0 : i32
    %c0_i32_0 = arith.constant 0 : i32
    %c0_i32_1 = arith.constant 0 : i32
    return %c0_i32, %c0_i32_0 : i32, i32
  }
  func.func @transform_1(%arg0: i32) -> (i32, i32) {
    %c0_i32 = arith.constant 0 : i32
    %c0_i32_0 = arith.constant 0 : i32
    return %c0_i32, %arg0 : i32, i32
  }
  func.func @transform_2(%arg0: i32) -> (i32, i32) {
    %c0_i32 = arith.constant 0 : i32
    %c0_i32_0 = arith.constant 0 : i32
    %c0_i32_1 = arith.constant 0 : i32
    return %c0_i32, %c0_i32_0 : i32, i32
  }
  func.func @transform_3(%arg0: i32) -> (i32, i32) {
    %c0_i32 = arith.constant 0 : i32
    %c0_i32_0 = arith.constant 0 : i32
    return %c0_i32, %arg0 : i32, i32
  }
}

module attributes {stable_mosaic.version = 11 : i64} {
  func.func @_stem_tail_kernel(%arg0: i32, %arg1: memref<8x8xbf16, #tpu.memory_space<vmem>>, %arg2: memref<16x8xbf16, #tpu.memory_space<vmem>>, %arg3: memref<16x8xbf16, #tpu.memory_space<vmem>>, %arg4: memref<8x128xbf16, #tpu.memory_space<vmem>>, %arg5: memref<8x128xbf16, #tpu.memory_space<vmem>>, %arg6: memref<8x2xf32, #tpu.memory_space<vmem>>, %arg7: memref<16x2xf32, #tpu.memory_space<vmem>>, %arg8: memref<16x128xf32, #tpu.memory_space<vmem>>, %arg9: memref<8x128xf32, #tpu.memory_space<vmem>>) attributes {dimension_semantics = [#tpu.dimension_semantics<parallel>], iteration_bounds = array<i64: 1>, scalar_prefetch = 0 : i64, scratch_operands = 0 : i64, tpu.core_type = #tpu.core_type<tc>, window_params = [{pipeline_mode = #tpu.pipeline_mode<synchronous>, transform_indices = @transform_0, window_bounds = array<i64: 8, 8>}, {pipeline_mode = #tpu.pipeline_mode<synchronous>, transform_indices = @transform_1, window_bounds = array<i64: 16, 8>}, {pipeline_mode = #tpu.pipeline_mode<synchronous>, transform_indices = @transform_2, window_bounds = array<i64: 16, 8>}, {transform_indices = @transform_3, window_bounds = array<i64: 8, 128>}, {transform_indices = @transform_4, window_bounds = array<i64: 8, 128>}, {pipeline_mode = #tpu.pipeline_mode<synchronous>, transform_indices = @transform_5, window_bounds = array<i64: 8, 2>}, {pipeline_mode = #tpu.pipeline_mode<synchronous>, transform_indices = @transform_6, window_bounds = array<i64: 16, 2>}, {transform_indices = @transform_7, window_bounds = array<i64: 16, 128>}, {transform_indices = @transform_8, window_bounds = array<i64: 8, 128>}]} {
    %c0 = arith.constant 0 : index
    %c0_0 = arith.constant 0 : index
    %0 = vector.load %arg1[%c0, %c0_0] : memref<8x8xbf16, #tpu.memory_space<vmem>>, vector<8x8xbf16>
    %c0_1 = arith.constant 0 : index
    %c0_2 = arith.constant 0 : index
    %1 = vector.load %arg4[%c0_1, %c0_2] : memref<8x128xbf16, #tpu.memory_space<vmem>>, vector<8x128xbf16>
    %cst = arith.constant dense<0.000000e+00> : vector<8x128xf32>
    %2 = tpu.matmul %0, %1, %cst {dimension_numbers = #tpu.dot_dimension_numbers<[1], [0], [0], [1], [0, 0, 1, 1], [], []>} : vector<8x8xbf16>, vector<8x128xbf16>, vector<8x128xf32> -> vector<8x128xf32>
    %c0_3 = arith.constant 0 : index
    %c0_4 = arith.constant 0 : index
    %3 = vector.load %arg6[%c0_3, %c0_4] : memref<8x2xf32, #tpu.memory_space<vmem>>, vector<8x2xf32>
    %4 = vector.extract_strided_slice %3 {offsets = [0, 0], sizes = [8, 1], strides = [1, 1]} : vector<8x2xf32> to vector<8x1xf32>
    %5 = vector.broadcast %4 : vector<8x1xf32> to vector<8x128xf32>
    %6 = arith.mulf %2, %5 : vector<8x128xf32>
    %7 = vector.extract_strided_slice %3 {offsets = [0, 1], sizes = [8, 1], strides = [1, 1]} : vector<8x2xf32> to vector<8x1xf32>
    %8 = vector.broadcast %7 : vector<8x1xf32> to vector<8x128xf32>
    %9 = arith.addf %6, %8 : vector<8x128xf32>
    %cst_5 = arith.constant 0.00999999977 : f32
    %10 = vector.broadcast %cst_5 : f32 to vector<8x128xf32>
    %11 = arith.mulf %10, %9 : vector<8x128xf32>
    %12 = arith.maximumf %9, %11 : vector<8x128xf32>
    %c0_6 = arith.constant 0 : index
    %c0_7 = arith.constant 0 : index
    %13 = vector.load %arg9[%c0_6, %c0_7] : memref<8x128xf32, #tpu.memory_space<vmem>>, vector<8x128xf32>
    tpu.vector_store %arg9[%c0_6, %c0_7], %12 {strides = array<i32>} : memref<8x128xf32, #tpu.memory_space<vmem>>, vector<8x128xf32>,
    %c0_8 = arith.constant 0 : index
    %c0_9 = arith.constant 0 : index
    %14 = vector.load %arg2[%c0_8, %c0_9] : memref<16x8xbf16, #tpu.memory_space<vmem>>, vector<16x8xbf16>
    %c0_10 = arith.constant 0 : index
    %c0_11 = arith.constant 0 : index
    %15 = vector.load %arg5[%c0_10, %c0_11] : memref<8x128xbf16, #tpu.memory_space<vmem>>, vector<8x128xbf16>
    %cst_12 = arith.constant dense<0.000000e+00> : vector<16x128xf32>
    %16 = tpu.matmul %14, %15, %cst_12 {dimension_numbers = #tpu.dot_dimension_numbers<[1], [0], [0], [1], [0, 0, 1, 1], [], []>} : vector<16x8xbf16>, vector<8x128xbf16>, vector<16x128xf32> -> vector<16x128xf32>
    %c0_13 = arith.constant 0 : index
    %c0_14 = arith.constant 0 : index
    %17 = vector.load %arg3[%c0_13, %c0_14] : memref<16x8xbf16, #tpu.memory_space<vmem>>, vector<16x8xbf16>
    %18 = arith.truncf %12 : vector<8x128xf32> to vector<8x128xbf16>
    %cst_15 = arith.constant dense<0.000000e+00> : vector<16x128xf32>
    %19 = tpu.matmul %17, %18, %cst_15 {dimension_numbers = #tpu.dot_dimension_numbers<[1], [0], [0], [1], [0, 0, 1, 1], [], []>} : vector<16x8xbf16>, vector<8x128xbf16>, vector<16x128xf32> -> vector<16x128xf32>
    %20 = arith.addf %16, %19 : vector<16x128xf32>
    %c0_16 = arith.constant 0 : index
    %c0_17 = arith.constant 0 : index
    %21 = vector.load %arg7[%c0_16, %c0_17] : memref<16x2xf32, #tpu.memory_space<vmem>>, vector<16x2xf32>
    %22 = vector.extract_strided_slice %21 {offsets = [0, 0], sizes = [16, 1], strides = [1, 1]} : vector<16x2xf32> to vector<16x1xf32>
    %23 = vector.broadcast %22 : vector<16x1xf32> to vector<16x128xf32>
    %24 = arith.mulf %20, %23 : vector<16x128xf32>
    %25 = vector.extract_strided_slice %21 {offsets = [0, 1], sizes = [16, 1], strides = [1, 1]} : vector<16x2xf32> to vector<16x1xf32>
    %26 = vector.broadcast %25 : vector<16x1xf32> to vector<16x128xf32>
    %27 = arith.addf %24, %26 : vector<16x128xf32>
    %cst_18 = arith.constant 0.00999999977 : f32
    %28 = vector.broadcast %cst_18 : f32 to vector<16x128xf32>
    %29 = arith.mulf %28, %27 : vector<16x128xf32>
    %30 = arith.maximumf %27, %29 : vector<16x128xf32>
    %c0_19 = arith.constant 0 : index
    %c0_20 = arith.constant 0 : index
    %31 = vector.load %arg8[%c0_19, %c0_20] : memref<16x128xf32, #tpu.memory_space<vmem>>, vector<16x128xf32>
    tpu.vector_store %arg8[%c0_19, %c0_20], %30 {strides = array<i32>} : memref<16x128xf32, #tpu.memory_space<vmem>>, vector<16x128xf32>,
    return
  }
  func.func @transform_0(%arg0: i32) -> (i32, i32) {
    %c0_i32 = arith.constant 0 : i32
    %c0_i32_0 = arith.constant 0 : i32
    %c0_i32_1 = arith.constant 0 : i32
    return %c0_i32, %c0_i32_0 : i32, i32
  }
  func.func @transform_1(%arg0: i32) -> (i32, i32) {
    %c0_i32 = arith.constant 0 : i32
    %c0_i32_0 = arith.constant 0 : i32
    %c0_i32_1 = arith.constant 0 : i32
    return %c0_i32, %c0_i32_0 : i32, i32
  }
  func.func @transform_2(%arg0: i32) -> (i32, i32) {
    %c0_i32 = arith.constant 0 : i32
    %c0_i32_0 = arith.constant 0 : i32
    %c0_i32_1 = arith.constant 0 : i32
    return %c0_i32, %c0_i32_0 : i32, i32
  }
  func.func @transform_3(%arg0: i32) -> (i32, i32) {
    %c0_i32 = arith.constant 0 : i32
    %c0_i32_0 = arith.constant 0 : i32
    return %c0_i32, %arg0 : i32, i32
  }
  func.func @transform_4(%arg0: i32) -> (i32, i32) {
    %c0_i32 = arith.constant 0 : i32
    %c0_i32_0 = arith.constant 0 : i32
    return %c0_i32, %arg0 : i32, i32
  }
  func.func @transform_5(%arg0: i32) -> (i32, i32) {
    %c0_i32 = arith.constant 0 : i32
    %c0_i32_0 = arith.constant 0 : i32
    %c0_i32_1 = arith.constant 0 : i32
    return %c0_i32, %c0_i32_0 : i32, i32
  }
  func.func @transform_6(%arg0: i32) -> (i32, i32) {
    %c0_i32 = arith.constant 0 : i32
    %c0_i32_0 = arith.constant 0 : i32
    %c0_i32_1 = arith.constant 0 : i32
    return %c0_i32, %c0_i32_0 : i32, i32
  }
  func.func @transform_7(%arg0: i32) -> (i32, i32) {
    %c0_i32 = arith.constant 0 : i32
    %c0_i32_0 = arith.constant 0 : i32
    return %c0_i32, %arg0 : i32, i32
  }
  func.func @transform_8(%arg0: i32) -> (i32, i32) {
    %c0_i32 = arith.constant 0 : i32
    %c0_i32_0 = arith.constant 0 : i32
    return %c0_i32, %arg0 : i32, i32
  }
}

</mosaic_0001>

<bundles_post_ra>
// kernel: _lambda_.10
= control target key start
LH: loop header
LB: loop body
LE: loop exit
PB: predicated region body
PF: predicated region fallthrough
CT: control target
= control target key end

     0   :  { %s388_s12 = smov 0   ;;  %s415_s0 = inlined_call_operand.vmem [shape: bf16[8,2], index: 0, kind: input, shape index: {}]   ;;  %s416_s1 = inlined_call_operand.vmem [shape: bf16[2,512], index: 1, kind: input, shape index: {}]   ;;  %s417_s2 = inlined_call_operand.vmem [shape: f32[8,2], index: 2, kind: input, shape index: {}]   ;;  %s418_s3 = inlined_call_operand.vmem [shape: bf16[8,512], index: 3, kind: output, shape index: {}]  }
   0x1 LB: > { %s329_s13 = sadd.s32 4294967295, %s363_s12   ;;  %p333_p0 = scmp.ge.s32.totalorder %s363_s12, 1  ;;  %s363_s12 = sphi %s388_s12, %s13_s12  }
   0x2   : > { %p137_p1 = scmp.lt.s32.totalorder %s363_s12, 3 }
   0x4   : > { %p138_p2 = pnand %p333_p0, %p137_p1 }
   0x5   : > { %s334_s14 = sshll.u32 (!%p138_p2), %s329_s13, 1 }
   0x6   : > { %141 = sbr.rel (%p138_p2) target bundleno = 230 (0xe6), region = 32  ;;  %p161_p3 = scmp.lt.s32.totalorder (!%p138_p2), %s334_s14, 3 }
   0xb   : > { %v186_v0 = vlaneseq  ;;  %v249_v1 = vld [vmem:[%s417_s2] sm:$0xff]  ;;  %v365_v2 = vmov 1966171168   ;;  %v366_v4 = vmov 0   ;;  %s420_s14 = smov (!%p161_p3, %s334_s14), 3  ;;  %vm201_vm0 = vcmask 1040384  }
   0xc   : > { %v184_v3 = vunpack.c.l.s4 %v365_v2  ;;  %240 = vmatprep.mubr.bf16.mxu0 %v366_v4  ;;  %355 = vset.pattern.permute.xlu0 %v366_v4  ;;  %s163_s19 = scalar_lea.vmem %s416_s1, %s420_s14  ;;  %v367_v9 = vmov 1   ;;  %v172_v14 = vld [vmem:[%s415_s0] sm:$0xf]  ;;  %vm197_vm1 = vcmask 15360   ;;  %s336_s22 = sshll.u32 %s420_s14, 2 }
   0xd   : > { %v187_v5 = vshrl.u32 %v186_v0, 7  ;;  %252 = vperm.xlu0 %355, %v249_v1   ;;  %v337_v8 = vld.sshfl [vmem:[%s163_s19] sm:$0x11 pattern:$0x75316420]  ;;  %s169_s25 = scalar_lea.vmem %s418_s3, %s336_s22 }
   0xe   : > { %v185_v6 = vunpack.c.0.s8 %v184_v3  ;;  %v182_v10 = vcombine.high %v337_v8, %v337_v8 }
  0x10   : > { %v188_v7 = vsub.s32 %v185_v6, %v187_v5 }
  0x11   : > { %356 = vset.pattern.permute.xlu0 %v367_v9 }
  0x12   : > { %v189_v11 = vrot.slane %v337_v8, %v188_v7  ;;  %258 = vperm.xlu0 %356, %v249_v1   ;;  %v196_v12 = vrot.slane %v182_v10, %v188_v7 }
  0x14   : > { %v203_v13 = vsel %vm201_vm0, %v189_v11, 0  ;;  %338 = vmatprep.subr.msk.bf16.mxu0 %vm201_vm0, %v196_v12 }
  0x15   : > { %223 = vmatpush1.bf16.msra.mxu0 %v203_v13 }
  0x18   : > { %339 = vmatmul.mubr.msk.bf16.vlgmr.msra.gmra.mxu0 %vm197_vm1, %v172_v14 }
  0x88   : > { %v253_v15 = vpop.permute.xlu0 %252 }
  0x8d   : > { %v259_v17 = vpop.permute.xlu0 %258 }
  0xd8   : > { %v242_v16 = vpop.f32.mrf.mxu0 }
  0xd9   : > { %v255_v18 = vmul.f32 %v253_v15, %v242_v16 }
  0xda   : > { %v244_v19 = vpop.f32.mrf.mxu0 }
  0xdb   : > { %v261_v20 = vadd.f32 %v259_v17, %v255_v18  ;;  %v256_v21 = vmul.f32 %v253_v15, %v244_v19 }
  0xdc   : > { %v246_v22 = vpop.f32.mrf.mxu0 }
  0xdd   : > { %v263_v23 = vmul.f32 0.01, %v261_v20  ;;  %v262_v24 = vadd.f32 %v259_v17, %v256_v21 }
  0xde   : > { %v247_v25 = vpop.f32.mrf.mxu0 }
  0xdf   : > { %v264_v26 = vmul.f32 0.01, %v262_v24  ;;  %v265_v27 = vmax.f32 %v261_v20, %v263_v23 }
  0xe1   : > { %v266_v28 = vmax.f32 %v262_v24, %v264_v26 }
  0xe3   : > { %v343_v29 = vpack.c.bf16 %v266_v28, %v265_v27 }
  0xe5   : > { %275 = vst [vmem:[%s169_s25] sm:$0xff] %v343_v29 }
  0xe6 PF: > { %s13_s12 = sadd.s32 1, %s363_s12  }
  0xe7   : > { %p10_p4 = scmp.ge.s32.totalorder %s13_s12, 4  }
  0xe9   :  { %12 = sbr.rel (!%p10_p4) target bundleno = 1 (0x1), region = 62 }

// kernel: _lambda_.12
= control target key start
LH: loop header
LB: loop body
LE: loop exit
PB: predicated region body
PF: predicated region fallthrough
CT: control target
= control target key end

     0   :  { %s384_s12 = smov 0   ;;  %s411_s0 = inlined_call_operand.vmem [shape: bf16[8,2], index: 0, kind: input, shape index: {}]   ;;  %s412_s1 = inlined_call_operand.vmem [shape: bf16[2,512], index: 1, kind: input, shape index: {}]   ;;  %s413_s2 = inlined_call_operand.vmem [shape: f32[8,2], index: 2, kind: input, shape index: {}]   ;;  %s414_s3 = inlined_call_operand.vmem [shape: bf16[8,512], index: 3, kind: output, shape index: {}]  }
   0x1 LB: > { %s325_s13 = sadd.s32 4294967295, %s359_s12   ;;  %p329_p0 = scmp.ge.s32.totalorder %s359_s12, 1  ;;  %s359_s12 = sphi %s384_s12, %s13_s12  }
   0x2   : > { %p137_p1 = scmp.lt.s32.totalorder %s359_s12, 3 }
   0x4   : > { %p138_p2 = pnand %p329_p0, %p137_p1 }
   0x5   : > { %s330_s14 = sshll.u32 (!%p138_p2), %s325_s13, 1 }
   0x6   : > { %141 = sbr.rel (%p138_p2) target bundleno = 226 (0xe2), region = 32  ;;  %p161_p3 = scmp.lt.s32.totalorder (!%p138_p2), %s330_s14, 3 }
   0xb   : > { %v186_v0 = vlaneseq  ;;  %v249_v1 = vld [vmem:[%s413_s2] sm:$0xff]  ;;  %v361_v2 = vmov 1966171168   ;;  %v362_v4 = vmov 0   ;;  %s416_s14 = smov (!%p161_p3, %s330_s14), 3  ;;  %vm201_vm0 = vcmask 1040384  }
   0xc   : > { %v184_v3 = vunpack.c.l.s4 %v361_v2  ;;  %240 = vmatprep.mubr.bf16.mxu0 %v362_v4  ;;  %351 = vset.pattern.permute.xlu0 %v362_v4  ;;  %s163_s19 = scalar_lea.vmem %s412_s1, %s416_s14  ;;  %v363_v9 = vmov 1   ;;  %v172_v14 = vld [vmem:[%s411_s0] sm:$0xf]  ;;  %vm197_vm1 = vcmask 15360   ;;  %s332_s22 = sshll.u32 %s416_s14, 2 }
   0xd   : > { %v187_v5 = vshrl.u32 %v186_v0, 7  ;;  %252 = vperm.xlu0 %351, %v249_v1   ;;  %v333_v8 = vld.sshfl [vmem:[%s163_s19] sm:$0x11 pattern:$0x75316420]  ;;  %s169_s25 = scalar_lea.vmem %s414_s3, %s332_s22 }
   0xe   : > { %v185_v6 = vunpack.c.0.s8 %v184_v3  ;;  %v182_v10 = vcombine.high %v333_v8, %v333_v8 }
  0x10   : > { %v188_v7 = vsub.s32 %v185_v6, %v187_v5 }
  0x11   : > { %352 = vset.pattern.permute.xlu0 %v363_v9 }
  0x12   : > { %v189_v11 = vrot.slane %v333_v8, %v188_v7  ;;  %258 = vperm.xlu0 %352, %v249_v1   ;;  %v196_v12 = vrot.slane %v182_v10, %v188_v7 }
  0x14   : > { %v203_v13 = vsel %vm201_vm0, %v189_v11, 0  ;;  %334 = vmatprep.subr.msk.bf16.mxu0 %vm201_vm0, %v196_v12 }
  0x15   : > { %223 = vmatpush1.bf16.msra.mxu0 %v203_v13 }
  0x18   : > { %335 = vmatmul.mubr.msk.bf16.vlgmr.msra.gmra.mxu0 %vm197_vm1, %v172_v14 }
  0x88   : > { %v253_v15 = vpop.permute.xlu0 %252 }
  0x8d   : > { %v259_v18 = vpop.permute.xlu0 %258 }
  0xd8   : > { %v242_v16 = vpop.f32.mrf.mxu0 }
  0xd9   : > { %v255_v17 = vmul.f32 %v253_v15, %v242_v16 }
  0xda   : > { %v244_v19 = vpop.f32.mrf.mxu0 }
  0xdb   : > { %v256_v20 = vmul.f32 %v253_v15, %v244_v19  ;;  %v261_v22 = vadd.f32 %v259_v18, %v255_v17 }
  0xdc   : > { %v246_v21 = vpop.f32.mrf.mxu0 }
  0xdd   : > { %v262_v23 = vadd.f32 %v259_v18, %v256_v20 }
  0xde   : > { %v247_v24 = vpop.f32.mrf.mxu0 }
  0xdf   : > { %v339_v25 = vpack.c.bf16 %v262_v23, %v261_v22 }
  0xe1   : > { %271 = vst [vmem:[%s169_s25] sm:$0xff] %v339_v25 }
  0xe2 PF: > { %s13_s12 = sadd.s32 1, %s359_s12  }
  0xe3   : > { %p10_p4 = scmp.ge.s32.totalorder %s13_s12, 4  }
  0xe5   :  { %12 = sbr.rel (!%p10_p4) target bundleno = 1 (0x1), region = 62 }

// kernel: _lambda_.11
= control target key start
LH: loop header
LB: loop body
LE: loop exit
PB: predicated region body
PF: predicated region fallthrough
CT: control target
= control target key end

     0   :  { %vm56_vm0 = vcmask 1043456   ;;  %v157_v0 = vmov 0.0   ;;  %vm158_vm1 = vmmov 0   ;;  %v159_v3 = vmov 0   ;;  %s205_s1 = inlined_call_operand.vmem [shape: bf16[72,128], index: 1, kind: input, shape index: {}]   ;;  %s206_s2 = inlined_call_operand.vmem [shape: f32[8,2], index: 2, kind: input, shape index: {}]   ;;  %s207_s0 = inlined_call_operand.vmem [shape: bf16[8,72], index: 0, kind: input, shape index: {}]   ;;  %s208_s3 = inlined_call_operand.vmem [shape: bf16[8,128], index: 3, kind: output, shape index: {}]  }
   0x1   :  { %132 = vmatprep.subr.bf16.mxu0 %v157_v0  ;;  %v152_v1 = vld [vmem:[%s205_s1 + $0x20] ss:$0 sps:$4 sm:$0xff]   ;;  %142 = vmatprep.mubr.msk.bf16.mxu0 %vm158_vm1, %v157_v0  ;;  %v153_v4 = vld [vmem:[%s205_s1 + $0x18] sm:$0xff]   ;;  %v154_v6 = vld [vmem:[%s205_s1 + $0x10] sm:$0xff]   ;;  %v160_v7 = vmov 1   ;;  %vm52_vm2 = vcmask 588800  }
   0x2   :  { %v58_v2 = vsel %vm56_vm0, %v152_v1, 0  ;;  %150 = vset.pattern.permute.xlu0 %v159_v3  ;;  %v100_v5 = vld [vmem:[%s206_s2] sm:$0xff]  ;;  %v155_v8 = vld [vmem:[%s205_s1 + $0x8] sm:$0xff]  }
   0x3   :  { %133 = vmatpush3.bf16.msra.mxu0 %v58_v2  ;;  %103 = vperm.xlu0 %150, %v100_v5   ;;  %v156_v9 = vld [vmem:[%s205_s1] sm:$0xff]  }
   0x4   :  { %134 = vmatprep.subr.bf16.mxu0 %v157_v0  ;;  %v15_v10 = vld [vmem:[%s207_s0] sm:$0xf] }
   0x7   :  { %135 = vmatpush3.bf16.msra.mxu0 %v153_v4  ;;  %151 = vset.pattern.permute.xlu0 %v160_v7 }
   0x8   :  { %136 = vmatprep.subr.bf16.mxu0 %v157_v0  ;;  %108 = vperm.xlu0 %151, %v100_v5  }
   0xb   :  { %137 = vmatpush3.bf16.msra.mxu0 %v154_v6 }
   0xc   :  { %138 = vmatprep.subr.bf16.mxu0 %v157_v0 }
   0xf   :  { %139 = vmatpush3.bf16.msra.mxu0 %v155_v8 }
  0x10   :  { %140 = vmatprep.subr.bf16.mxu0 %v157_v0 }
  0x13   :  { %141 = vmatpush3.bf16.msra.mxu0 %v156_v9 }
  0x16   :  { %143 = vmatmul.mubr.msk.bf16.vlgmr.msra.gmra.mxu0 %vm52_vm2, %v15_v10 }
  0x7e   :  { %v104_v11 = vpop.permute.xlu0 %103 }
  0x83   :  { %v109_v13 = vpop.permute.xlu0 %108 }
  0xd6   :  { %v94_v12 = vpop.f32.mrf.mxu0 }
  0xd7   :  { %v106_v14 = vmul.f32 %v104_v11, %v94_v12 }
  0xd8   :  { %v144_v15 = vpop.f32.mrf.mxu0 }
  0xd9   :  { %v111_v16 = vadd.f32 %v109_v13, %v106_v14 }
  0xda   :  { %v97_v17 = vpop.f32.mrf.mxu0 }
  0xdb   :  { %v112_v18 = vmul.f32 0.01, %v111_v16 }
  0xdc   :  { %v145_v19 = vpop.f32.mrf.mxu0 }
  0xdd   :  { %v113_v20 = vmax.f32 %v111_v16, %v112_v18 }
  0xdf   :  { %v114_v21 = vpack.c.bf16 %v113_v20, %v113_v20 }
  0xe1   :  { %115 = vst [vmem:[%s208_s3] sm:$0xf] %v114_v21 }

// kernel: _lambda_.13
= control target key start
LH: loop header
LB: loop body
LE: loop exit
PB: predicated region body
PF: predicated region fallthrough
CT: control target
= control target key end

     0   :  { %vm24_vm0 = vcmask 1043456   ;;  %v123_v0 = vmov 0.0   ;;  %vm124_vm1 = vmmov 0   ;;  %v125_v4 = vmov 0   ;;  %s169_s1 = inlined_call_operand.vmem [shape: bf16[8,128], index: 1, kind: input, shape index: {}]   ;;  %s170_s0 = inlined_call_operand.vmem [shape: bf16[8,8], index: 0, kind: input, shape index: {}]   ;;  %s171_s2 = inlined_call_operand.vmem [shape: f32[8,4], index: 2, kind: input, shape index: {}]   ;;  %s172_s3 = inlined_call_operand.vmem [shape: bf16[8,128], index: 3, kind: input, shape index: {}]   ;;  %s173_s4 = inlined_call_operand.vmem [shape: bf16[8,128], index: 4, kind: output, shape index: {}]  }
   0x1   :  { %106 = vmatprep.subr.bf16.mxu0 %v123_v0  ;;  %v19_v1 = vld [vmem:[%s169_s1] sm:$0xf]  ;;  %108 = vmatprep.mubr.msk.bf16.mxu0 %vm124_vm1, %v123_v0  ;;  %vm20_vm2 = vcmask 64512   ;;  %v126_v6 = vmov 2   ;;  %v127_v7 = vmov 1   ;;  %v128_v8 = vmov 3  }
   0x2   :  { %v68_v2 = vld [vmem:[%s171_s2] sm:$0xff]  ;;  %v26_v3 = vsel %vm24_vm0, %v19_v1, 0  ;;  %118 = vset.pattern.permute.xlu0 %v125_v4  ;;  %120 = vset.pattern.permute.xlu1 %v126_v6 }
   0x3   :  { %107 = vmatpush3.bf16.msra.mxu0 %v26_v3  ;;  %v18_v5 = vld [vmem:[%s170_s0] sm:$0xf]  ;;  %71 = vperm.xlu0 %118, %v68_v2  }
   0x4   :  { %83 = vperm.xlu1 %120, %v68_v2   ;;  %v92_v19 = vld [vmem:[%s172_s3] sm:$0xf] }
   0x5   :  { %v93_v23 = vunpack.c.l.bf16 %v92_v19 }
   0x6   :  { %109 = vmatmul.mubr.msk.bf16.vlgmr.msra.gmra.mxu0 %vm20_vm2, %v18_v5 }
   0x7   :  { %119 = vset.pattern.permute.xlu0 %v127_v7 }
   0x8   :  { %76 = vperm.xlu0 %119, %v68_v2   ;;  %121 = vset.pattern.permute.xlu1 %v128_v8 }
   0x9   :  { %88 = vperm.xlu1 %121, %v68_v2  }
   0xc   :  { %122 = vset.pattern.permute.xlu0 %v128_v8 }
  0x7e   :  { %v72_v9 = vpop.permute.xlu0 %71 }
  0x7f   :  { %v84_v14 = vpop.permute.xlu1 %83 }
  0x83   :  { %v77_v11 = vpop.permute.xlu0 %76 }
  0x84   :  { %v89_v21 = vpop.permute.xlu1 %88 }
  0xc6   :  { %v62_v10 = vpop.f32.mrf.mxu0 }
  0xc7   :  { %v74_v12 = vmul.f32 %v72_v9, %v62_v10 }
  0xc8   :  { %v110_v13 = vpop.f32.mrf.mxu0 }
  0xc9   :  { %v79_v15 = vadd.f32 %v77_v11, %v74_v12 }
  0xca   :  { %v65_v16 = vpop.f32.mrf.mxu0 }
  0xcb   :  { %v80_v17 = vmul.f32 0.01, %v79_v15 }
  0xcc   :  { %v111_v18 = vpop.f32.mrf.mxu0 }
  0xcd   :  { %v81_v20 = vmax.f32 %v79_v15, %v80_v17 }
  0xcf   :  { %v86_v22 = vmul.f32 %v84_v14, %v81_v20 }
  0xd1   :  { %v91_v24 = vadd.f32 %v89_v21, %v86_v22 }
  0xd3   :  { %v94_v25 = vadd.f32 %v93_v23, %v91_v24 }
  0xd5   :  { %v95_v26 = vmul.f32 0.01, %v94_v25 }
  0xd7   :  { %v96_v27 = vmax.f32 %v94_v25, %v95_v26 }
  0xd9   :  { %v97_v28 = vpack.c.bf16 %v96_v27, %v96_v27 }
  0xdb   :  { %98 = vst [vmem:[%s173_s4] sm:$0xf] %v97_v28 }

// kernel: _lambda_.14
= control target key start
LH: loop header
LB: loop body
LE: loop exit
PB: predicated region body
PF: predicated region fallthrough
CT: control target
= control target key end

     0   :  { %vm21_vm0 = vcmask 1043456   ;;  %v100_v0 = vmov 0.0   ;;  %vm101_vm1 = vmmov 0   ;;  %v102_v4 = vmov 0   ;;  %s136_s1 = inlined_call_operand.vmem [shape: bf16[8,128], index: 1, kind: input, shape index: {}]   ;;  %s137_s0 = inlined_call_operand.vmem [shape: bf16[8,8], index: 0, kind: input, shape index: {}]   ;;  %s138_s2 = inlined_call_operand.vmem [shape: f32[8,2], index: 2, kind: input, shape index: {}]   ;;  %s139_s3 = inlined_call_operand.vmem [shape: bf16[8,128], index: 3, kind: output, shape index: {}]  }
   0x1   :  { %88 = vmatprep.subr.bf16.mxu0 %v100_v0  ;;  %v16_v1 = vld [vmem:[%s136_s1] sm:$0xf]  ;;  %90 = vmatprep.mubr.msk.bf16.mxu0 %vm101_vm1, %v100_v0  ;;  %vm17_vm2 = vcmask 64512   ;;  %v103_v6 = vmov 1  }
   0x2   :  { %v65_v2 = vld [vmem:[%s138_s2] sm:$0xff]  ;;  %v23_v3 = vsel %vm21_vm0, %v16_v1, 0  ;;  %98 = vset.pattern.permute.xlu0 %v102_v4 }
   0x3   :  { %89 = vmatpush3.bf16.msra.mxu0 %v23_v3  ;;  %v15_v5 = vld [vmem:[%s137_s0] sm:$0xf]  ;;  %68 = vperm.xlu0 %98, %v65_v2  }
   0x6   :  { %91 = vmatmul.mubr.msk.bf16.vlgmr.msra.gmra.mxu0 %vm17_vm2, %v15_v5 }
   0x7   :  { %99 = vset.pattern.permute.xlu0 %v103_v6 }
   0x8   :  { %73 = vperm.xlu0 %99, %v65_v2  }
  0x7e   :  { %v69_v7 = vpop.permute.xlu0 %68 }
  0x83   :  { %v74_v9 = vpop.permute.xlu0 %73 }
  0xc6   :  { %v59_v8 = vpop.f32.mrf.mxu0 }
  0xc7   :  { %v71_v10 = vmul.f32 %v69_v7, %v59_v8 }
  0xc8   :  { %v92_v11 = vpop.f32.mrf.mxu0 }
  0xc9   :  { %v76_v12 = vadd.f32 %v74_v9, %v71_v10 }
  0xca   :  { %v62_v13 = vpop.f32.mrf.mxu0 }
  0xcb   :  { %v77_v14 = vmul.f32 0.01, %v76_v12 }
  0xcc   :  { %v93_v15 = vpop.f32.mrf.mxu0 }
  0xcd   :  { %v78_v16 = vmax.f32 %v76_v12, %v77_v14 }
  0xcf   :  { %v79_v17 = vpack.c.bf16 %v78_v16, %v78_v16 }
  0xd1   :  { %80 = vst [vmem:[%s139_s3] sm:$0xf] %v79_v17 }

// kernel: _lambda_.17
= control target key start
LH: loop header
LB: loop body
LE: loop exit
PB: predicated region body
PF: predicated region fallthrough
CT: control target
= control target key end

     0   :  { %vm35_vm0 = vcmask 1043456   ;;  %v281_v0 = vmov 0.0   ;;  %vm282_vm1 = vmmov 0   ;;  %v283_v4 = vmov 0   ;;  %s372_s3 = inlined_call_operand.vmem [shape: bf16[8,128], index: 3, kind: input, shape index: {}]   ;;  %s373_s0 = inlined_call_operand.vmem [shape: bf16[8,8], index: 0, kind: input, shape index: {}]   ;;  %s374_s5 = inlined_call_operand.vmem [shape: f32[8,2], index: 5, kind: input, shape index: {}]   ;;  %s375_s6 = inlined_call_operand.vmem [shape: f32[16,2], index: 6, kind: input, shape index: {}]   ;;  %s376_s4 = inlined_call_operand.vmem [shape: bf16[8,128], index: 4, kind: input, shape index: {}]   ;;  %s377_s1 = inlined_call_operand.vmem [shape: bf16[16,8], index: 1, kind: input, shape index: {}]   ;;  %s378_s2 = inlined_call_operand.vmem [shape: bf16[16,8], index: 2, kind: input, shape index: {}]   ;;  %s379_s8 = inlined_call_operand.vmem [shape: f32[8,128], index: 8, kind: output, shape index: {1}]   ;;  %s380_s7 = inlined_call_operand.vmem [shape: f32[16,128], index: 7, kind: output, shape index: {0}]  }
   0x1   :  { %253 = vmatprep.subr.bf16.mxu0 %v281_v0  ;;  %v30_v1 = vld [vmem:[%s372_s3] sm:$0xf]  ;;  %255 = vmatprep.mubr.msk.bf16.mxu0 %vm282_vm1, %v281_v0  ;;  %vm31_vm2 = vcmask 64512   ;;  %v284_v6 = vmov 1   ;;  %v205_v7 = vld [vmem:[%s375_s6 + $0x8] sm:$0xff] }
   0x2   :  { %v79_v2 = vld [vmem:[%s374_s5] sm:$0xff]  ;;  %v37_v3 = vsel %vm35_vm0, %v30_v1, 0  ;;  %275 = vset.pattern.permute.xlu0 %v283_v4  ;;  %259 = vmatprep.subr.bf16.mxu1 %v281_v0 }
   0x3   :  { %254 = vmatpush3.bf16.msra.mxu0 %v37_v3  ;;  %v29_v5 = vld [vmem:[%s373_s0] sm:$0xf]  ;;  %82 = vperm.xlu0 %275, %v79_v2  }
   0x4   :  { %265 = vmatprep.subr.bf16.mxu0 %v281_v0  ;;  %261 = vmatprep.mubr.msk.bf16.mxu1 %vm282_vm1, %v281_v0  ;;  %v96_v8 = vld [vmem:[%s376_s4] sm:$0xf] }
   0x5   :  { %277 = vset.pattern.permute.xlu1 %v283_v4  ;;  %v161_v9 = vsel %vm35_vm0, %v96_v8, 0  ;;  %v279_v10 = vld [vmem:[%s377_s1] sm:$0xff]  }
   0x6   :  { %256 = vmatmul.mubr.msk.bf16.vlgmr.msra.gmra.mxu0 %vm31_vm2, %v29_v5  ;;  %v204_v11 = vld [vmem:[%s375_s6] sm:$0xff] }
   0x7   :  { %276 = vset.pattern.permute.xlu0 %v284_v6  ;;  %267 = vmatprep.mubr.msk.bf16.mxu0 %vm282_vm1, %v281_v0  ;;  %v280_v24 = vld [vmem:[%s378_s2] sm:$0xff]  }
   0x8   :  { %87 = vperm.xlu0 %276, %v79_v2   ;;  %266 = vmatpush3.bf16.msra.mxu0 %v161_v9 }
   0x9   :  { %208 = vperm.xlu1 %277, %v204_v11  }
   0xc   :  { %223 = vperm.xlu0 %276, %v205_v7  }
   0xd   :  { %213 = vperm.xlu1 %277, %v205_v7  }
   0xe   :  { %268 = vmatmul.mubr.msk.bf16.vlgmr.msra.gmra.mxu0 %vm31_vm2, %v279_v10 }
  0x11   :  { %278 = vset.pattern.permute.xlu1 %v284_v6 }
  0x12   :  { %219 = vperm.xlu1 %278, %v204_v11  }
  0x7e   :  { %v83_v12 = vpop.permute.xlu0 %82 }
  0x83   :  { %v88_v15 = vpop.permute.xlu0 %87 }
  0x84   :  { %v209_v29 = vpop.permute.xlu1 %208 }
  0x87   :  { %v224_v42 = vpop.permute.xlu0 %223 }
  0x88   :  { %v214_v30 = vpop.permute.xlu1 %213 }
  0x8d   :  { %v220_v34 = vpop.permute.xlu1 %219 }
  0xc6   :  { %v73_v13 = vpop.f32.mrf.mxu0 }
  0xc7   :  { %v85_v14 = vmul.f32 %v83_v12, %v73_v13 }
  0xc8   :  { %v257_v16 = vpop.f32.mrf.mxu0 }
  0xc9   :  { %v90_v17 = vadd.f32 %v88_v15, %v85_v14 }
  0xca   :  { %v76_v18 = vpop.f32.mrf.mxu0 }
  0xcb   :  { %v91_v19 = vmul.f32 0.01, %v90_v17 }
  0xcc   :  { %v258_v20 = vpop.f32.mrf.mxu0 }
  0xcd   :  { %v92_v21 = vmax.f32 %v90_v17, %v91_v19 }
  0xce   :  { %v197_v25 = vpop.f32.mrf.mxu0 }
  0xcf   :  { %93 = vst [vmem:[%s379_s8] sm:$0xff] %v92_v21  ;;  %v99_v22 = vpack.c.bf16 %v92_v21, %v92_v21 }
  0xd0   :  { %v269_v26 = vpop.f32.mrf.mxu0 }
  0xd1   :  { %v109_v23 = vsel %vm35_vm0, %v99_v22, 0 }
  0xd2   :  { %260 = vmatpush3.bf16.msra.mxu1 %v109_v23  ;;  %v200_v27 = vpop.f32.mrf.mxu0 }
  0xd4   :  { %v270_v28 = vpop.f32.mrf.mxu0 }
  0xd5   :  { %262 = vmatmul.mubr.msk.bf16.vlgmr.msra.gmra.mxu1 %vm31_vm2, %v280_v24 }
 0x195   :  { %v145_v31 = vpop.f32.mrf.mxu1 }
 0x196   :  { %v198_v32 = vadd.f32 %v197_v25, %v145_v31 }
 0x197   :  { %v263_v33 = vpop.f32.mrf.mxu1 }
 0x198   :  { %v216_v35 = vmul.f32 %v209_v29, %v198_v32 }
 0x199   :  { %v148_v36 = vpop.f32.mrf.mxu1 }
 0x19a   :  { %v226_v37 = vadd.f32 %v220_v34, %v216_v35  ;;  %v201_v38 = vadd.f32 %v200_v27, %v148_v36 }
 0x19b   :  { %v264_v39 = vpop.f32.mrf.mxu1 }
 0x19c   :  { %v228_v40 = vmul.f32 0.01, %v226_v37  ;;  %v217_v41 = vmul.f32 %v214_v30, %v201_v38 }
 0x19e   :  { %v230_v43 = vmax.f32 %v226_v37, %v228_v40  ;;  %v227_v44 = vadd.f32 %v224_v42, %v217_v41 }
 0x1a0   :  { %232 = vst [vmem:[%s380_s7] sm:$0xff] %v230_v43  ;;  %v229_v45 = vmul.f32 0.01, %v227_v44 }
 0x1a2   :  { %v231_v46 = vmax.f32 %v227_v44, %v229_v45 }
 0x1a4   :  { %233 = vst [vmem:[%s380_s7 + $0x8] sm:$0xff] %v231_v46 }

</bundles_post_ra>
